<compile_context>
chip_gen: v7x
topology: tpu7x:2x2x1
jax: 0.10.0
libtpu: 0.0.40
codegen_flags: <defaults>
</compile_context>

<pallas_src>
import functools

import jax
import jax.numpy as jnp
from jax.experimental import pallas as pl
from jax.experimental.pallas import tpu as pltpu


def _round_up(x, m):
    return ((x + m - 1) // m) * m


def _vmem_budget_bytes():
    """Physical VMEM per core, with headroom left for compiler scratch."""
    try:
        phys = int(pltpu.get_tpu_info().vmem_capacity_bytes)
    except Exception:
        phys = 64 << 20  # not on TPU / API unavailable -> assume smallest (v7x)
    return int(phys * 0.80)


# ---------------------------------------------------------------------------
# Single-pass kernel: one (Bt, C, HWp) slab per grid step (read-once/write-once)
# ---------------------------------------------------------------------------
def _cam_single_pass_kernel(x_ref, wcat_t_ref, o_ref, *, hw_real, inv_hw):
    xb = x_ref[...]                                    # (Bt, C, HWp) f32
    hwp = xb.shape[-1]

    if hw_real != hwp:
        # Padded lanes are zero (harmless for the sum) but must not win the max.
        lane = jax.lax.broadcasted_iota(jnp.int32, (1, 1, hwp), 2)
        xm = jnp.where(lane < hw_real, xb, -jnp.inf)
    else:
        xm = xb

    # Global pooling over the spatial (lane) axis.
    mx = jnp.max(xm, axis=2)                           # (Bt, C)
    av = jnp.sum(xb, axis=2) * inv_hw                  # (Bt, C)

    # Single fused gate matmul: y = [mx | av] @ [Wfin·Wmax | Wfin·Wavg]^T
    pooled = jnp.concatenate([mx, av], axis=1)         # (Bt, 2C)
    y = jnp.dot(pooled, wcat_t_ref[...],
                preferred_element_type=jnp.float32)    # (Bt, C)

    # out = x * sigmoid(y) + x == x * (sigmoid(y) + 1)
    gate1 = jax.nn.sigmoid(y) + 1.0                    # (Bt, C)
    o_ref[...] = (xb * gate1[:, :, None]).astype(o_ref.dtype)


# ---------------------------------------------------------------------------
# Two-pass fallback (slab too large for VMEM): pass 1 = HW-tiled pool + gate
# ---------------------------------------------------------------------------
def _cam_pool_gate_kernel(x_ref, wcat_ref, g_ref, mx_sc, sm_sc, *,
                          hw_real, tile_hw, inv_hw):
    t = pl.program_id(1)

    @pl.when(t == 0)
    def _():
        mx_sc[...] = jnp.full_like(mx_sc, -jnp.inf)
        sm_sc[...] = jnp.zeros_like(sm_sc)

    xb = x_ref[0]                                      # (C, tile_hw)
    lane = jax.lax.broadcasted_iota(jnp.int32, (1, tile_hw), 1) + t * tile_hw
    xm = jnp.where(lane < hw_real, xb, -jnp.inf)

    mx_sc[...] = jnp.maximum(mx_sc[...], jnp.max(xm, axis=1, keepdims=True))
    sm_sc[...] = sm_sc[...] + jnp.sum(xb, axis=1, keepdims=True)

    @pl.when(t == pl.num_programs(1) - 1)
    def _():
        pooled = jnp.concatenate([mx_sc[...], sm_sc[...] * inv_hw], axis=0)  # (2C,1)
        y = jnp.dot(wcat_ref[...], pooled,
                    preferred_element_type=jnp.float32)                     # (C,1)
        g_ref[0] = jax.nn.sigmoid(y) + 1.0


# Pass 2 = HW-tiled, lane-dense gate application.
def _cam_apply_gate_kernel(g_ref, x_ref, o_ref):
    o_ref[...] = (x_ref[...] * g_ref[...]).astype(o_ref.dtype)


def cam_forward(x, w_max, w_avg, w_final, *, force_two_pass=False,
                max_tile_hw=None, alias_x_output=False):
    """x: (B, C, H, W) float32 (NCHW). w_*: (C, C) weights of the 1x1 convs.

    alias_x_output=True is only beneficial when the caller donates x
    (jax.jit(..., donate_argnums=...)); otherwise XLA inserts a defensive
    full copy of x, adding an extra HBM read+write.
    """
    B, C, H, W = x.shape
    HW = H * W
    HWp = _round_up(HW, 128)                    # lane-dense loads/stores
    itemsize = jnp.dtype(x.dtype).itemsize
    inv_hw = 1.0 / float(HW)

    # Fold the three 1x1 convs and fuse the two gate matvecs into one matmul.
    wcat = jnp.concatenate([w_final @ w_max, w_final @ w_avg], axis=1)  # (C, 2C)

    # Free metadata reshape NCHW -> (B, C, HW); pad HW once if not lane-dense.
    x_r = x.reshape(B, C, HW)
    if HWp != HW:
        x_r = jnp.pad(x_r, ((0, 0), (0, 0), (0, HWp - HW)))

    vmem_budget = _vmem_budget_bytes()
    slab = C * HWp * itemsize                   # one batch element in VMEM
    weight_bytes = 2 * C * C * itemsize

    def footprint(bt):
        # double-buffered input + double-buffered output + weights + slack
        return 4 * bt * slab + 2 * weight_bytes + (1 << 20)

    single_pass = (not force_two_pass) and footprint(1) <= vmem_budget

    if single_pass:
        # Super-batch: largest divisor Bt of B whose block stays near ~4 MiB
        # (but at least one full batch) and whose pipelined footprint fits.
        target = 4 << 20
        bt = 1
        for cand in range(1, B + 1):
            if B % cand:
                continue
            if footprint(cand) > vmem_budget:
                continue
            if cand * slab <= max(target, slab):
                bt = cand
        grid = (B // bt,)
        vmem_limit = int(min(max(footprint(bt), 8 << 20), vmem_budget))

        cost = pl.CostEstimate(
            flops=int(3 * B * C * HW + 4 * B * C * C),
            transcendentals=int(B * C),
            bytes_accessed=int(2 * B * C * HWp * itemsize + 2 * weight_bytes),
        )

        kernel = functools.partial(_cam_single_pass_kernel,
                                   hw_real=HW, inv_hw=inv_hw)
        out_r = pl.pallas_call(
            kernel,
            out_shape=jax.ShapeDtypeStruct((B, C, HWp), x.dtype),
            grid_spec=pltpu.PrefetchScalarGridSpec(
                num_scalar_prefetch=0,
                grid=grid,
                in_specs=[
                    pl.BlockSpec((bt, C, HWp), lambda i: (i, 0, 0)),
                    pl.BlockSpec((2 * C, C), lambda i: (0, 0)),
                ],
                out_specs=pl.BlockSpec((bt, C, HWp), lambda i: (i, 0, 0)),
            ),
            compiler_params=pltpu.CompilerParams(
                dimension_semantics=("parallel",),
                vmem_limit_bytes=vmem_limit,
            ),
            cost_estimate=cost,
            input_output_aliases={0: 0} if alias_x_output else {},
        )(x_r, wcat.T)
    else:
        # Two-pass fallback: pool+gate pass (HW-tiled), then gate-apply pass
        # (HW-tiled, lane-dense, both grid axes parallel -> splits across TCs).
        tile_target = 2 << 20
        ht = max(128, min(HWp, (tile_target // (C * itemsize)) // 128 * 128))
        if max_tile_hw is not None:
            ht = max(128, min(ht, max_tile_hw // 128 * 128))
        while HWp % ht:
            ht -= 128
        T = HWp // ht
        tile_bytes = C * ht * itemsize
        vmem_limit = int(min(max(6 * tile_bytes + (1 << 20), 8 << 20), vmem_budget))

        pool_kernel = functools.partial(_cam_pool_gate_kernel,
                                        hw_real=HW, tile_hw=ht, inv_hw=inv_hw)
        gates = pl.pallas_call(
            pool_kernel,
            out_shape=jax.ShapeDtypeStruct((B, C, 1), jnp.float32),
            grid_spec=pltpu.PrefetchScalarGridSpec(
                num_scalar_prefetch=0,
                grid=(B, T),
                in_specs=[
                    pl.BlockSpec((1, C, ht), lambda b, t: (b, 0, t)),
                    pl.BlockSpec((C, 2 * C), lambda b, t: (0, 0)),
                ],
                out_specs=pl.BlockSpec((1, C, 1), lambda b, t: (b, 0, 0)),
                scratch_shapes=[pltpu.VMEM((C, 1), jnp.float32),
                                pltpu.VMEM((C, 1), jnp.float32)],
            ),
            compiler_params=pltpu.CompilerParams(
                dimension_semantics=("parallel", "arbitrary"),
                vmem_limit_bytes=vmem_limit,
            ),
            cost_estimate=pl.CostEstimate(
                flops=int(2 * B * C * HW + 4 * B * C * C),
                transcendentals=int(B * C),
                bytes_accessed=int(B * C * HWp * itemsize + 2 * weight_bytes),
            ),
        )(x_r, wcat)

        out_r = pl.pallas_call(
            _cam_apply_gate_kernel,
            out_shape=jax.ShapeDtypeStruct((B, C, HWp), x.dtype),
            grid_spec=pltpu.PrefetchScalarGridSpec(
                num_scalar_prefetch=0,
                grid=(B, T),
                in_specs=[
                    pl.BlockSpec((1, C, 1), lambda b, t: (b, 0, 0)),
                    pl.BlockSpec((1, C, ht), lambda b, t: (b, 0, t)),
                ],
                out_specs=pl.BlockSpec((1, C, ht), lambda b, t: (b, 0, t)),
            ),
            compiler_params=pltpu.CompilerParams(
                dimension_semantics=("parallel", "parallel"),
                vmem_limit_bytes=vmem_limit,
            ),
            cost_estimate=pl.CostEstimate(
                flops=int(B * C * HW),
                transcendentals=0,
                bytes_accessed=int(2 * B * C * HWp * itemsize),
            ),
            input_output_aliases={1: 0} if alias_x_output else {},
        )(gates, x_r)

    if HWp != HW:
        out_r = out_r[:, :, :HW]
    return out_r.reshape(B, C, H, W)


def cam_reference(x, w_max, w_avg, w_final):
    """Pure-JAX reference mirroring the PyTorch CAM forward."""
    mx = jnp.max(x, axis=(2, 3))                           # (B, C)
    av = jnp.mean(x, axis=(2, 3))                          # (B, C)
    max_path = mx @ w_max.T
    avg_path = av @ w_avg.T
    y = (max_path + avg_path) @ w_final.T                  # (B, C)
    gate = jax.nn.sigmoid(y)[:, :, None, None]             # (B, C, 1, 1)
    return x * gate + x


if __name__ == "__main__":
    B, C, H, W = 2, 8, 16, 16   # HW = 256 -> already lane-dense

    key = jax.random.PRNGKey(0)
    kx, k1, k2, k3, kx2 = jax.random.split(key, 5)

    scale = 1.0 / float(C) ** 0.5
    w_max = jax.random.uniform(k1, (C, C), jnp.float32, -scale, scale)
    w_avg = jax.random.uniform(k2, (C, C), jnp.float32, -scale, scale)
    w_fin = jax.random.uniform(k3, (C, C), jnp.float32, -scale, scale)

    # 1) Main single-pass path (super-batched grid, lane-dense HW).
    x = jax.random.normal(kx, (B, C, H, W), dtype=jnp.float32)
    ref = jax.block_until_ready(cam_reference(x, w_max, w_avg, w_fin))
    out = jax.block_until_ready(cam_forward(x, w_max, w_avg, w_fin))
    assert out.shape == (B, C, H, W)
    assert jnp.allclose(out, ref, atol=1e-5, rtol=1e-5), "single-pass mismatch"

    # 2) HW not a multiple of 128 -> padded slab + masked-max path.
    x2 = jax.random.normal(kx2, (B, C, 10, 10), dtype=jnp.float32)
    ref2 = jax.block_until_ready(cam_reference(x2, w_max, w_avg, w_fin))
    out2 = jax.block_until_ready(cam_forward(x2, w_max, w_avg, w_fin))
    assert jnp.allclose(out2, ref2, atol=1e-5, rtol=1e-5), "padded-path mismatch"

    # 3) Forced two-pass fallback (pool+gate pass, then tiled apply pass).
    out3 = jax.block_until_ready(
        cam_forward(x, w_max, w_avg, w_fin, force_two_pass=True, max_tile_hw=128))
    assert jnp.allclose(out3, ref, atol=1e-5, rtol=1e-5), "two-pass mismatch"

    print("KERNEL_OK")
</pallas_src>

<mosaic_0001>
module attributes {stable_mosaic.version = 11 : i64} {
  func.func @_cam_single_pass_kernel(%arg0: i32, %arg1: memref<2x8x256xf32, #tpu.memory_space<vmem>>, %arg2: memref<16x8xf32, #tpu.memory_space<vmem>>, %arg3: memref<2x8x256xf32, #tpu.memory_space<vmem>>) attributes {dimension_semantics = [#tpu.dimension_semantics<parallel>], iteration_bounds = array<i64: 1>, scalar_prefetch = 0 : i64, scratch_operands = 0 : i64, tpu.core_type = #tpu.core_type<tc>, window_params = [{transform_indices = @transform_0, window_bounds = array<i64: 2, 8, 256>}, {pipeline_mode = #tpu.pipeline_mode<synchronous>, transform_indices = @transform_1, window_bounds = array<i64: 16, 8>}, {transform_indices = @transform_2, window_bounds = array<i64: 2, 8, 256>}]} {
    %c0 = arith.constant 0 : index
    %c0_0 = arith.constant 0 : index
    %c0_1 = arith.constant 0 : index
    %0 = vector.load %arg1[%c0, %c0_0, %c0_1] : memref<2x8x256xf32, #tpu.memory_space<vmem>>, vector<2x8x256xf32>
    %cst = arith.constant dense<0xFF800000> : vector<2x8xf32>
    %1 = vector.multi_reduction <maximumf>, %0, %cst [2] : vector<2x8x256xf32> to vector<2x8xf32>
    %cst_2 = arith.constant dense<0.000000e+00> : vector<2x8xf32>
    %2 = vector.multi_reduction <add>, %0, %cst_2 [2] : vector<2x8x256xf32> to vector<2x8xf32>
    %cst_3 = arith.constant 3.906250e-03 : f32
    %3 = vector.broadcast %cst_3 : f32 to vector<2x8xf32>
    %4 = arith.mulf %2, %3 : vector<2x8xf32>
    %5 = tpu.concatenate %1, %4 in 1 : vector<2x8xf32>, vector<2x8xf32> -> vector<2x16xf32>
    %c0_4 = arith.constant 0 : index
    %c0_5 = arith.constant 0 : index
    %6 = vector.load %arg2[%c0_4, %c0_5] : memref<16x8xf32, #tpu.memory_space<vmem>>, vector<16x8xf32>
    %cst_6 = arith.constant dense<0.000000e+00> : vector<2x8xf32>
    %7 = tpu.matmul %5, %6, %cst_6 {dimension_numbers = #tpu.dot_dimension_numbers<[1], [0], [0], [1], [0, 0, 1, 1], [], []>} : vector<2x16xf32>, vector<16x8xf32>, vector<2x8xf32> -> vector<2x8xf32>
    %8 = arith.negf %7 : vector<2x8xf32>
    %9 = math.exp %8 : vector<2x8xf32>
    %cst_7 = arith.constant 1.000000e+00 : f32
    %10 = vector.broadcast %cst_7 : f32 to vector<2x8xf32>
    %11 = arith.addf %10, %9 : vector<2x8xf32>
    %12 = arith.divf %10, %11 : vector<2x8xf32>
    %cst_8 = arith.constant 1.000000e+00 : f32
    %13 = vector.broadcast %cst_8 : f32 to vector<2x8xf32>
    %14 = arith.addf %12, %13 : vector<2x8xf32>
    %15 = vector.shape_cast %14 : vector<2x8xf32> to vector<2x8x1xf32>
    %16 = vector.broadcast %15 : vector<2x8x1xf32> to vector<2x8x256xf32>
    %17 = arith.mulf %0, %16 : vector<2x8x256xf32>
    %c0_9 = arith.constant 0 : index
    %c0_10 = arith.constant 0 : index
    %c0_11 = arith.constant 0 : index
    %18 = vector.load %arg3[%c0_9, %c0_10, %c0_11] : memref<2x8x256xf32, #tpu.memory_space<vmem>>, vector<2x8x256xf32>
    tpu.vector_store %arg3[%c0_9, %c0_10, %c0_11], %17 {strides = array<i32>} : memref<2x8x256xf32, #tpu.memory_space<vmem>>, vector<2x8x256xf32>,
    return
  }
  func.func @transform_0(%arg0: i32) -> (i32, i32, i32) {
    %c0_i32 = arith.constant 0 : i32
    %c0_i32_0 = arith.constant 0 : i32
    %c0_i32_1 = arith.constant 0 : i32
    return %arg0, %c0_i32, %c0_i32_0 : i32, i32, i32
  }
  func.func @transform_1(%arg0: i32) -> (i32, i32) {
    %c0_i32 = arith.constant 0 : i32
    %c0_i32_0 = arith.constant 0 : i32
    %c0_i32_1 = arith.constant 0 : i32
    return %c0_i32, %c0_i32_0 : i32, i32
  }
  func.func @transform_2(%arg0: i32) -> (i32, i32, i32) {
    %c0_i32 = arith.constant 0 : i32
    %c0_i32_0 = arith.constant 0 : i32
    %c0_i32_1 = arith.constant 0 : i32
    return %arg0, %c0_i32, %c0_i32_0 : i32, i32, i32
  }
}

</mosaic_0001>

<bundles_post_ra>
// kernel: tpu_custom_call.1
= control target key start
LH: loop header
LB: loop body
LE: loop exit
PB: predicated region body
PF: predicated region fallthrough
CT: control target
= control target key end

     0   :  { %7 = vsyncpa [#allocation3], 0  ;;  %s338_s0 = inlined_call_operand.hbm [shape: f32[2,8,256], index: 0, kind: input, shape index: {}]   ;;  %s339_s1 = inlined_call_operand.vmem [shape: f32[16,8], index: 1, kind: input, shape index: {}]   ;;  %s340_s2 = inlined_call_operand.hbm [shape: f32[2,8,256], index: 2, kind: output, shape index: {}]  }
   0x1   :  { %8 = vsyncpa [#allocation4], 0  ;;  %s270_s9 = smov [#allocation2]   ;;  %s222_s13 = scalar_lea.hbm %s338_s0, 512 }
   0x2   :  { %s14_s10 = sshll.u32 %s270_s9, 4  ;;  %p223_p0 = scmp.ne.s32.totalorder %s338_s0, %s222_s13  ;;  %s15_s10 = int_to_ptr.vmem [resolvable:$true] %s14_s10 }
   0x3   :  { %p226_p1 = scmp.lt.u32.totalorder %s222_s13, %s338_s0 }
   0x5   :  { %p228_p2 = pnand %p226_p1, %p223_p0 }
   0x7   :  { %231 = shalt.err (!%p228_p2)
}
   0x8   :  { %s232_s18 = scalar_lea.vmem %s15_s10, 512  ;;  %p237_p4 = scmp.lt.s32.totalorder %s15_s10, %s15_s10 }
   0x9   :  { %p233_p3 = scmp.ne.s32.totalorder %s15_s10, %s232_s18  ;;  %p238_p5 = scmp.lt.s32.totalorder %s232_s18, %s232_s18 }
   0xb   :  { %p239_p6 = por %p238_p5, %p237_p4 }
   0xd   :  { %p240_p7 = pnand %p239_p6, %p233_p3 }
   0xf   :  { %243 = shalt.err (!%p240_p7)
}
  0x10   :  { %s271_s19 = smov 256   ;;  %s272_s20 = smov 16  }
  0x11   :  { %20 = dma.hbm_to_vmem [thread:$0]  %s338_s0, 512, %s15_s10, [#allocation3], %s271_s19, %s271_s19, %s272_s20  }
  0x12   :  { %266 = dma.done.wait [#allocation3], 512  }
  0x13   :  { %267 = vsyncadd [#allocation3], 4294966784  ;;  %v307_v0 = vld [vmem:[#allocation2] sm:$0xff]  ;;  %v309_v1 = vld [vmem:[#allocation2 + $0x8] sm:$0xff]  ;;  %v273_v11 = vmov 0.0|0.0   ;;  %vm274_vm0 = vmmov 0   ;;  %v46_v13 = vlaneseq }
  0x14   :  { %v28_v2 = vld [vmem:[#allocation2 + $0x10] sm:$0xff]  ;;  %v36_v3 = vadd.f32 %v309_v1, %v307_v0  ;;  %v30_v4 = vmax.f32 %v307_v0, %v309_v1  ;;  %v29_v5 = vld [vmem:[#allocation2 + $0x18] sm:$0xff]  ;;  %v74_v8 = vld [vmem:[%s339_s1] sm:$0xff]  ;;  %208 = vmatprep.subr.bf16.mxu0 %v273_v11  ;;  %v275_v12 = vmov 0.0   ;;  %vm56_vm1 = vcmask 1041409  }
  0x15   :  { %v39_v6 = vadd.f32 %v29_v5, %v28_v2  ;;  %v33_v7 = vmax.f32 %v28_v2, %v29_v5  ;;  %v75_v9 = vld [vmem:[%s339_s1 + $0x8] sm:$0xff]  ;;  %205 = vmatprep.mubr.msk.f32.mxu0 %vm274_vm0, %v275_v12  ;;  %v47_v14 = vand.u32 127, %v46_v13  ;;  %v49_v15 = vshrl.u32 %v46_v13, 7  ;;  %s276_s1 = smov [#allocation5]  }
  0x16   :  { %37 = vadd.xlane.f32.xlu0 %v36_v3  ;;  %31 = vmax.xlane.f32.xlu1 %v30_v4  ;;  %v209_v10 = vpack.c.bf16 %v75_v9, %v74_v8  ;;  %vm72_vm2 = vcmask 64512   ;;  %vm76_vm3 = vcmask 130048   ;;  %s184_s26 = sshll.u32 %s276_s1, 4  ;;  %s185_s26 = int_to_ptr.vmem [resolvable:$true] %s184_s26 }
  0x17   :  { %v61_v16 = vadd.s32 4294967288, %v47_v14  ;;  %v50_v21 = vsub.s32 %v47_v14, %v49_v15  ;;  %v166_v37 = vsub.s32 1, %v49_v15  ;;  %v159_v38 = vsub.s32 0, %v49_v15  ;;  %s244_s27 = scalar_lea.vmem %s185_s26, 512  ;;  %p249_p9 = scmp.lt.s32.totalorder %s185_s26, %s185_s26 }
  0x18   :  { %210 = vmatpush3.bf16.msra.mxu0 %v209_v10  ;;  %p245_p8 = scmp.ne.s32.totalorder %s185_s26, %s244_s27  ;;  %p250_p10 = scmp.lt.s32.totalorder %s244_s27, %s244_s27 }
  0x19   :  { %v64_v19 = vsub.s32 %v61_v16, %v49_v15 }
  0x1a   :  { %40 = vadd.xlane.f32.xlu0 %v39_v6  ;;  %34 = vmax.xlane.f32.xlu1 %v33_v7  ;;  %p251_p11 = por %p250_p10, %p249_p9 }
  0x1c   :  { %p252_p12 = pnand %p251_p11, %p245_p8 }
  0xa3   :  { %v38_v17 = vpop.xlane.xlu0 %37  ;;  %v32_v18 = vpop.xlane.xlu1 %31 }
  0xa4   :  { %v42_v20 = vmul.f32 0.00390625, %v38_v17  ;;  %v51_v27 = vrot.slane %v32_v18, %v50_v21 }
  0xa6   :  { %v65_v26 = vrot.slane %v42_v20, %v64_v19 }
  0xa7   :  { %v41_v22 = vpop.xlane.xlu0 %40  ;;  %v35_v23 = vpop.xlane.xlu1 %34 }
  0xa8   :  { %v43_v24 = vmul.f32 0.00390625, %v41_v22  ;;  %v55_v25 = vrot.slane %v35_v23, %v50_v21 }
  0xaa   :  { %v69_v28 = vrot.slane %v43_v24, %v64_v19  ;;  %v57_v29 = vsel %vm56_vm1, %v55_v25, %v51_v27 }
  0xac   :  { %v70_v30 = vsel %vm56_vm1, %v69_v28, %v65_v26 }
  0xad   :  { %v73_v31 = vsel %vm72_vm2, %v57_v29, %v70_v30 }
  0xae   :  { %206 = vmatmul.mubr.msk.f32.vlgmr.msra.gmra.mrb[0].mxu0 %vm76_vm3, %v73_v31 }
 0x181   :  { %v146_v32 = vpop.f32.mrb[0].mxu0 }
 0x182   :  { %v197_v33 = vmul.f32 -1.442695, %v146_v32  ;;  %v207_v34 = vpop.f32.mrb[1].mxu0 }
 0x184   :  { %218 = vpow2.f32 %v197_v33 }
 0x18e   :  { %v219_v35 = vpop.eup %218 }
 0x18f   :  { %v153_v36 = vadd.f32 1.0, %v219_v35 }
 0x191   :  { %220 = vrcp.f32 %v153_v36 }
 0x19b   :  { %v221_v39 = vpop.eup %220 }
 0x19c   :  { %v156_v40 = vadd.f32 1.0, %v221_v39 }
 0x19e   :  { %v167_v41 = vrot.slane %v156_v40, %v166_v37  ;;  %v160_v42 = vrot.slane %v156_v40, %v159_v38 }
 0x1a0   :  { %169 = vbcast.lane.b32.xlu1 %v167_v41, 256  ;;  %162 = vbcast.lane.b32.xlu0 %v160_v42, 256 }
 0x212   :  { %v170_v43 = vpop.permute.xlu1 %169  ;;  %v163_v44 = vpop.permute.xlu0 %162 }
 0x213   :  { %v173_v45 = vmul.f32 %v170_v43, %v28_v2  ;;  %v174_v46 = vmul.f32 %v170_v43, %v29_v5  ;;  %v171_v47 = vmul.f32 %v163_v44, %v307_v0  ;;  %v172_v48 = vmul.f32 %v163_v44, %v309_v1 }
 0x215   :  { %177 = vst [vmem:[#allocation5 + $0x10] sm:$0xff] %v173_v45  ;;  %178 = vst [vmem:[#allocation5 + $0x18] sm:$0xff] %v174_v46 }
 0x216   :  { %175 = vst [vmem:[#allocation5] sm:$0xff] %v171_v47  ;;  %176 = vst [vmem:[#allocation5 + $0x8] sm:$0xff] %v172_v48 }
 0x217   :  { %255 = shalt.err (!%p252_p12)
}
 0x218   :  { %s256_s30 = scalar_lea.hbm %s340_s2, 512 }
 0x219   :  { %p257_p13 = scmp.ne.s32.totalorder %s340_s2, %s256_s30  ;;  %p260_p0 = scmp.lt.u32.totalorder %s256_s30, %s340_s2 }
 0x21b   :  { %p262_p1 = pnand %p260_p0, %p257_p13 }
 0x21d   :  { %265 = shalt.err (!%p262_p1)
}
 0x21e   :  { %190 = dma.vmem_to_hbm [thread:$0]  %s185_s26, 512, %s340_s2, [#allocation4], %s271_s19, %s271_s19, %s272_s20  }
 0x21f   :  { %268 = dma.done.wait [#allocation4], 512  }
 0x220   :  { %269 = vsyncadd [#allocation4], 4294966784 }
 0x221   :  { %194 = vsyncpa [#allocation3], 1 }
 0x222   :  { %195 = vsyncpa [#allocation4], 1 }

</bundles_post_ra>
